<compile_context>
chip_gen: v7x
topology: tpu7x:2x2x1
jax: 0.10.0
libtpu: 0.0.40
codegen_flags: <defaults>
</compile_context>

<pallas_src>
import functools

import jax
import jax.numpy as jnp
from jax.experimental import pallas as pl
from jax.experimental.pallas import tpu as pltpu  # noqa: F401 (TPU backend)

POSE_OFFSET = 1.20919958


# ---------------------------------------------------------------------------
# Pallas kernel: fused linear layer (all four prediction heads concatenated)
# ---------------------------------------------------------------------------
def _fused_linear_kernel(feat_ref, w_ref, b_ref, out_ref):
    # feat_ref: (B, K), w_ref: (K, Np), b_ref: (1, Np), out_ref: (B, Np)
    out_ref[...] = (
        jnp.dot(feat_ref[...], w_ref[...], preferred_element_type=jnp.float32)
        + b_ref[...]
    )


def fused_linear(feat, w_padded, b_padded):
    """Compute feat @ w_padded + b_padded with a single-block Pallas call.

    feat:     (B, K)   float32  (unpadded; full-array block is exempt from 8x128)
    w_padded: (K, Np)  float32  (pre-padded at init, Np multiple of 128)
    b_padded: (1, Np)  float32  (pre-padded at init; constant offsets folded in)
    """
    M, K = feat.shape
    Kw, Np = w_padded.shape
    assert K == Kw
    # No grid, no BlockSpecs: single full-array block per operand, resident in
    # VMEM, one MXU pass.  At these sizes (B=2, K=32, Np=256) this is pure
    # launch-latency work, so the lightest possible pallas_call is best.
    return pl.pallas_call(
        _fused_linear_kernel,
        out_shape=jax.ShapeDtypeStruct((M, Np), jnp.float32),
    )(feat, w_padded, b_padded)


# ---------------------------------------------------------------------------
# Parameter construction (deterministic, mirrors the PyTorch __init__ logic)
# ---------------------------------------------------------------------------
def init_predictor_params(key, nz_feat, num_verts, num_joints, n_shapedirs=10):
    keys = jax.random.split(key, 8)
    nv3 = num_verts * 3
    nj3 = num_joints * 3

    # --- ShapePredictor: weight set from shapedirs.T, bias zero ------------
    # cfg['MODEL']['N_SHAPE_FEAT'] taken equal to nz_feat (weight shape must
    # match Linear(nz_feat, num_verts*3)).
    shapedirs = 0.01 * jax.random.normal(keys[0], (n_shapedirs, nv3), jnp.float32)
    Bmat = shapedirs.T  # (nv3, n_shapedirs)
    n = min(n_shapedirs, nz_feat)
    w_shape = jnp.zeros((nv3, nz_feat), jnp.float32).at[:, :n].set(Bmat[:, :n])
    b_shape = jnp.zeros((nv3,), jnp.float32)
    # TODO(synk): ShapePredictor.__init__ also builds `self.fc = nb.fc(...)`
    # (net_blocks helper) which is never used in forward(); omitted.

    # --- ScalePredictor: default PyTorch Linear init ------------------------
    bound = 1.0 / jnp.sqrt(jnp.float32(nz_feat))
    w_scale = jax.random.uniform(keys[1], (1, nz_feat), jnp.float32, -bound, bound)
    b_scale = jax.random.uniform(keys[2], (1,), jnp.float32, -bound, bound)

    # --- TransPredictor: normal(0, 1e-4) init --------------------------------
    w_xy = 1e-4 * jax.random.normal(keys[3], (2, nz_feat), jnp.float32)
    b_xy = 1e-4 * jax.random.normal(keys[4], (2,), jnp.float32)
    w_z = 1e-4 * jax.random.normal(keys[5], (1, nz_feat), jnp.float32)
    b_z = 1e-4 * jax.random.normal(keys[6], (1,), jnp.float32)
    # forward: trans[:,0] += 1.0 ; trans[:,2] = 1.0 + z  -> fold into biases
    b_xy = b_xy.at[0].add(1.0)
    b_z = b_z + 1.0

    # --- PosePredictor: default Linear init + constant offsets --------------
    w_pose = jax.random.uniform(keys[7], (nj3, nz_feat), jnp.float32, -bound, bound)
    b_pose = jnp.zeros((nj3,), jnp.float32)
    b_pose = b_pose.at[0].add(POSE_OFFSET)
    b_pose = b_pose.at[1].add(POSE_OFFSET)
    b_pose = b_pose.at[2].add(-POSE_OFFSET)

    # Concatenate all heads: [shape | scale | trans_xy | trans_z | pose]
    W_all = jnp.concatenate([w_shape, w_scale, w_xy, w_z, w_pose], axis=0)  # (N, nz)
    b_all = jnp.concatenate([b_shape, b_scale, b_xy, b_z, b_pose], axis=0)  # (N,)
    n_out = W_all.shape[0]

    # Pre-pad once at init time to a lane-dense width (multiple of 128) so the
    # forward pass feeds the pallas_call directly with no per-call padding.
    n_pad = ((n_out + 127) // 128) * 128
    W_padded = jnp.zeros((nz_feat, n_pad), jnp.float32).at[:, :n_out].set(W_all.T)
    b_padded = jnp.zeros((1, n_pad), jnp.float32).at[0, :n_out].set(b_all)

    return {
        "W": W_padded,  # (nz_feat, Np) -- pre-transposed + pre-padded
        "b": b_padded,  # (1, Np)
        "num_verts": num_verts,
        "num_joints": num_joints,
    }


# ---------------------------------------------------------------------------
# Forward pass
# ---------------------------------------------------------------------------
@functools.partial(jax.jit, static_argnames=("num_verts", "num_joints"))
def _predictor_forward_impl(feat, W, b, num_verts, num_joints):
    out = fused_linear(feat, W, b)  # (B, Np) lane-dense, padded cols unused

    nv3 = num_verts * 3
    nj3 = num_joints * 3
    B = feat.shape[0]

    # Slice heads directly out of the padded output (no intermediate copy).
    shape_pred = out[:, :nv3].reshape(B, num_verts, 3)
    scale_pred = out[:, nv3 : nv3 + 1]
    trans_pred = out[:, nv3 + 1 : nv3 + 4]          # [xy0+1, xy1, 1+z]
    pose_pred = out[:, nv3 + 4 : nv3 + 4 + nj3]     # offsets already in bias
    return shape_pred, scale_pred, trans_pred, pose_pred


def predictor_forward(params, feat, enc_feat=None):
    # enc_feat is accepted but unused, matching the PyTorch Predictor.forward.
    return _predictor_forward_impl(
        feat,
        params["W"],
        params["b"],
        num_verts=params["num_verts"],
        num_joints=params["num_joints"],
    )


# ---------------------------------------------------------------------------
# Main
# ---------------------------------------------------------------------------
if __name__ == "__main__":
    nz_feat = 32
    nenc_feat = 64
    num_verts = 40
    num_joints = 35
    batch = 2

    key = jax.random.PRNGKey(0)
    k_params, k_feat, k_enc = jax.random.split(key, 3)

    params = init_predictor_params(k_params, nz_feat, num_verts, num_joints)

    feat = jax.random.normal(k_feat, (batch, nz_feat), jnp.float32)
    enc_feat = jax.random.normal(k_enc, (batch, nenc_feat), jnp.float32)

    shape_pred, scale_pred, trans_pred, pose_pred = predictor_forward(
        params, feat, enc_feat
    )
    jax.block_until_ready((shape_pred, scale_pred, trans_pred, pose_pred))

    assert shape_pred.shape == (batch, num_verts, 3)
    assert scale_pred.shape == (batch, 1)
    assert trans_pred.shape == (batch, 3)
    assert pose_pred.shape == (batch, num_joints * 3)

    # Reference check against plain-JAX linear heads (unpadded columns).
    nv3 = num_verts * 3
    nj3 = num_joints * 3
    n_out = nv3 + 4 + nj3
    ref = feat @ params["W"][:, :n_out] + params["b"][0, :n_out]
    ref_shape = ref[:, :nv3].reshape(batch, num_verts, 3)
    ref_scale = ref[:, nv3 : nv3 + 1]
    ref_trans = ref[:, nv3 + 1 : nv3 + 4]
    ref_pose = ref[:, nv3 + 4 :]
    assert jnp.allclose(shape_pred, ref_shape, atol=1e-5)
    assert jnp.allclose(scale_pred, ref_scale, atol=1e-5)
    assert jnp.allclose(trans_pred, ref_trans, atol=1e-5)
    assert jnp.allclose(pose_pred, ref_pose, atol=1e-5)

    print("KERNEL_OK")
</pallas_src>

<mosaic_0001>
module attributes {stable_mosaic.version = 11 : i64} {
  func.func @_fused_linear_kernel(%arg0: memref<2x32xf32, #tpu.memory_space<vmem>>, %arg1: memref<32x256xf32, #tpu.memory_space<vmem>>, %arg2: memref<1x256xf32, #tpu.memory_space<vmem>>, %arg3: memref<2x256xf32, #tpu.memory_space<vmem>>) attributes {dimension_semantics = [], scalar_prefetch = 0 : i64, scratch_operands = 0 : i64, tpu.core_type = #tpu.core_type<tc>} {
    %c0 = arith.constant 0 : index
    %c0_0 = arith.constant 0 : index
    %0 = vector.load %arg0[%c0, %c0_0] : memref<2x32xf32, #tpu.memory_space<vmem>>, vector<2x32xf32>
    %c0_1 = arith.constant 0 : index
    %c0_2 = arith.constant 0 : index
    %1 = vector.load %arg1[%c0_1, %c0_2] : memref<32x256xf32, #tpu.memory_space<vmem>>, vector<32x256xf32>
    %cst = arith.constant dense<0.000000e+00> : vector<2x256xf32>
    %2 = tpu.matmul %0, %1, %cst {dimension_numbers = #tpu.dot_dimension_numbers<[1], [0], [0], [1], [0, 0, 1, 1], [], []>} : vector<2x32xf32>, vector<32x256xf32>, vector<2x256xf32> -> vector<2x256xf32>
    %c0_3 = arith.constant 0 : index
    %c0_4 = arith.constant 0 : index
    %3 = vector.load %arg2[%c0_3, %c0_4] : memref<1x256xf32, #tpu.memory_space<vmem>>, vector<1x256xf32>
    %4 = vector.broadcast %3 : vector<1x256xf32> to vector<2x256xf32>
    %5 = arith.addf %2, %4 : vector<2x256xf32>
    %c0_5 = arith.constant 0 : index
    %c0_6 = arith.constant 0 : index
    %6 = vector.load %arg3[%c0_5, %c0_6] : memref<2x256xf32, #tpu.memory_space<vmem>>, vector<2x256xf32>
    tpu.vector_store %arg3[%c0_5, %c0_6], %5 {strides = array<i32>} : memref<2x256xf32, #tpu.memory_space<vmem>>, vector<2x256xf32>,
    return
  }
}

</mosaic_0001>

<bundles_post_ra>
// kernel: _predictor_forward_impl.1
= control target key start
LH: loop header
LB: loop body
LE: loop exit
PB: predicated region body
PF: predicated region fallthrough
CT: control target
= control target key end

     0   :  { %8 = vsyncpa [#allocation3], 0  ;;  %s279_s0 = inlined_call_operand.hbm [shape: f32[2,32], index: 0, kind: input, shape index: {}]   ;;  %s280_s1 = inlined_call_operand.hbm [shape: f32[32,256], index: 1, kind: input, shape index: {}]   ;;  %s281_s2 = inlined_call_operand.vmem [shape: f32[1,256], index: 2, kind: input, shape index: {}]   ;;  %s282_s3 = inlined_call_operand.vmem [shape: f32[2,256], index: 3, kind: output, shape index: {}]  }
   0x1   :  { %9 = vsyncpa [#allocation5], 0  ;;  %s217_s12 = smov [#allocation2]   ;;  %s218_s14 = smov [#allocation4]  }
   0x2   :  { %s16_s13 = sshll.u32 %s217_s12, 4  ;;  %s25_s15 = sshll.u32 %s218_s14, 4  ;;  %s17_s13 = int_to_ptr.vmem [resolvable:$true] %s16_s13  ;;  %s242_s15 = int_to_ptr.vmem [resolvable:$true] %s25_s15 }
   0x3   :  { %s169_s18 = scalar_lea.hbm %s279_s0, 32 }
   0x4   :  { %p170_p0 = scmp.ne.s32.totalorder %s279_s0, %s169_s18  ;;  %p173_p1 = scmp.lt.u32.totalorder %s169_s18, %s279_s0 }
   0x6   :  { %p175_p2 = pnand %p173_p1, %p170_p0 }
   0x8   :  { %178 = shalt.err (!%p175_p2)
}
   0x9   :  { %s179_s23 = scalar_lea.vmem %s17_s13, 32  ;;  %p184_p4 = scmp.lt.s32.totalorder %s17_s13, %s17_s13 }
   0xa   :  { %p180_p3 = scmp.ne.s32.totalorder %s17_s13, %s179_s23  ;;  %p185_p5 = scmp.lt.s32.totalorder %s179_s23, %s179_s23 }
   0xc   :  { %p186_p6 = por %p185_p5, %p184_p4 }
   0xe   :  { %p187_p7 = pnand %p186_p6, %p180_p3 }
  0x10   :  { %190 = shalt.err (!%p187_p7)
}
  0x11   :  { %19 = dma.hbm_to_vmem [thread:$0]  %s279_s0, 32, %s17_s13, [#allocation3]  }
  0x12   :  { %s191_s28 = scalar_lea.hbm %s280_s1, 1024 }
  0x13   :  { %p192_p8 = scmp.ne.s32.totalorder %s280_s1, %s191_s28  ;;  %p195_p9 = scmp.lt.u32.totalorder %s191_s28, %s280_s1 }
  0x15   :  { %p197_p10 = pnand %p195_p9, %p192_p8 }
  0x17   :  { %200 = shalt.err (!%p197_p10)
}
  0x18   :  { %s201_s6 = scalar_lea.vmem %s242_s15, 1024  ;;  %p206_p12 = scmp.lt.s32.totalorder %s242_s15, %s242_s15 }
  0x19   :  { %p202_p11 = scmp.ne.s32.totalorder %s242_s15, %s201_s6  ;;  %p207_p13 = scmp.lt.s32.totalorder %s201_s6, %s201_s6 }
  0x1b   :  { %p208_p0 = por %p207_p13, %p206_p12 }
  0x1d   :  { %p209_p1 = pnand %p208_p0, %p202_p11 }
  0x1f   :  { %212 = shalt.err (!%p209_p1)
}
  0x20   :  { %s219_s0 = smov 256   ;;  %s220_s7 = smov 16  }
  0x21   :  { %31 = dma.hbm_to_vmem [thread:$0]  %s280_s1, 1024, %s242_s15, [#allocation5], %s219_s0, %s219_s0, %s220_s7  }
  0x22   :  { %213 = dma.done.wait [#allocation3], 32  }
  0x23   :  { %214 = vsyncadd [#allocation3], 4294967264 }
  0x24   :  { %215 = dma.done.wait [#allocation5], 1024  }
  0x25   :  { %216 = vsyncadd [#allocation5], 4294966272  ;;  %v221_v0 = vmov 0.0   ;;  %v42_v1 = vld [vmem:[#allocation4 + $0x8] sm:$0xff]  ;;  %v44_v2 = vld [vmem:[#allocation4 + $0x18] sm:$0xff]  ;;  %vm61_vm0 = vcmask 261120   ;;  %v51_v14 = vlaneseq }
  0x26   :  { %129 = vmatprep.mubr.f32.mxu0 %v221_v0  ;;  %v41_v3 = vld [vmem:[#allocation4] sm:$0xff]  ;;  %v156_v4 = vpack.c.bf16 %v44_v2, %v42_v1  ;;  %v43_v5 = vld [vmem:[#allocation4 + $0x10] sm:$0xff]  ;;  %v46_v6 = vld [vmem:[#allocation4 + $0x28] sm:$0xff] }
  0x27   :  { %v48_v7 = vld [vmem:[#allocation4 + $0x38] sm:$0xff]  ;;  %v158_v8 = vpack.c.bf16 %v43_v5, %v41_v3  ;;  %v45_v10 = vld [vmem:[#allocation4 + $0x20] sm:$0xff]  ;;  %v47_v11 = vld [vmem:[#allocation4 + $0x30] sm:$0xff]  ;;  %v52_v15 = vshrl.u32 %v51_v14, 7 }
  0x28   :  { %v160_v9 = vpack.c.bf16 %v48_v7, %v46_v6  ;;  %157 = vmatprep.subr.bf16.mxu0 %v156_v4  ;;  %v162_v12 = vpack.c.bf16 %v47_v11, %v45_v10  ;;  %v40_v13 = vld [vmem:[#allocation2] sm:$0x3]  ;;  %v49_v17 = vld [vmem:[%s281_s2] sm:$0x3] }
  0x29   :  { %159 = vmatpush1.bf16.msra.mxu0 %v158_v8  ;;  %v53_v16 = vsub.s32 0, %v52_v15  ;;  %v57_v18 = vsub.s32 1, %v52_v15 }
  0x2a   :  { %161 = vmatprep.subr.bf16.mxu0 %v160_v9 }
  0x2b   :  { %v54_v19 = vrot.slane %v49_v17, %v53_v16  ;;  %v58_v20 = vrot.slane %v49_v17, %v57_v18 }
  0x2d   :  { %163 = vmatpush1.bf16.msra.mxu0 %v162_v12 }
  0x30   :  { %154 = vmatmul.mubr.msk.f32.vlgmr.msra.gmra.mrb[0].mxu0 %vm61_vm0, %v40_v13 }
 0x103   :  { %v131_v21 = vpop.f32.mrb[0].mxu0 }
 0x104   :  { %v132_v22 = vadd.f32 %v131_v21, %v54_v19  ;;  %v133_v23 = vpop.f32.mrb[1].mxu0 }
 0x105   :  { %v134_v24 = vadd.f32 %v133_v23, %v58_v20 }
 0x107   :  { %v138_v25 = vcombine.low %v132_v22, %v134_v24 }
 0x109   :  { %155 = vst.sshfl [vmem:[%s282_s3] sm:$0x33 pattern:$0x76325410] %v138_v25 }
 0x10a   :  { %152 = vsyncpa [#allocation3], 1 }
 0x10b   :  { %153 = vsyncpa [#allocation5], 1 }

</bundles_post_ra>
